<compile_context>
chip_gen: v6e
topology: v6e:2x2x1
jax: 0.10.0
libtpu: 0.0.40
codegen_flags: <defaults>
</compile_context>

<pallas_src>
import functools

import jax
import jax.numpy as jnp
from jax.experimental import pallas as pl
from jax.experimental.pallas import tpu as pltpu


def _round_up(x: int, m: int) -> int:
    return ((x + m - 1) // m) * m


_VMEM_BUDGET = 40 * 1024 * 1024  # conservative working-set budget (fits v7x)


def _vmem_need_bytes(tm: int, Kp: int, Ep: int) -> int:
    """Double-buffered working set of the kernel for a given row tile."""
    return (2 * tm * Kp * 2      # patches tile, bf16, double-buffered
            + 2 * tm * Ep * 4    # output tile,  f32, double-buffered
            + 2 * Kp * Ep * 2    # folded weight, bf16 (counted x2 buffers)
            + 2 * 1 * Ep * 4)    # folded bias,   f32


def _choose_row_tile(R: int, Kp: int, Ep: int, max_tile: int = 1024):
    """Pick (TM, Rp): big row tile, little padding, fits the VMEM budget."""
    Rp16 = _round_up(max(R, 1), 16)
    if Rp16 <= max_tile and _vmem_need_bytes(Rp16, Kp, Ep) <= _VMEM_BUDGET:
        return Rp16, Rp16                                  # single full tile
    for tm in (1024, 768, 512, 384, 256, 192, 128, 96, 64, 48, 32, 16):
        if tm > max_tile:
            continue
        rp = _round_up(R, tm)
        small_waste = (rp - R) <= max(rp // 16, 16)        # <= ~6% padded rows
        if small_waste and _vmem_need_bytes(tm, Kp, Ep) <= _VMEM_BUDGET:
            return tm, rp
    return 16, _round_up(R, 16)


def _extract_patches(x, patch_size: int):
    """NCHW -> (B*gh*gw, C*P*P), flattened in (c, kh, kw) order (torch layout)."""
    B, C, H, W = x.shape
    P = patch_size
    gh, gw = H // P, W // P
    xp = x.reshape(B, C, gh, P, gw, P)
    xp = jnp.transpose(xp, (0, 2, 4, 1, 3, 5))             # (B, gh, gw, C, P, P)
    return xp.reshape(B * gh * gw, C * P * P)


def _fold_params(conv_w, conv_b, lin_w, lin_b):
    """Fold Conv2d + Linear into one (K, E) weight and (E,) bias, in f32."""
    E = conv_w.shape[0]
    K = conv_w.shape[1] * conv_w.shape[2] * conv_w.shape[3]
    w1 = conv_w.reshape(E, K).astype(jnp.float32)          # (E, K)
    wl = lin_w.astype(jnp.float32)                          # (E_out, E_in)
    w_fold = jnp.dot(w1.T, wl.T)                            # (K, E)
    b_fold = jnp.dot(conv_b.astype(jnp.float32), wl.T) + lin_b.astype(jnp.float32)
    return w_fold, b_fold


def _patch_gen_kernel(patches_ref, w_ref, b_ref, out_ref):
    # patches_ref: (TM, Kp) bf16   one row-tile of flattened patches
    # w_ref:       (Kp, Ep) bf16   folded conv+linear weight, VMEM-resident
    # b_ref:       (1,  Ep) f32    folded bias
    # out_ref:     (TM, Ep) f32
    acc = jnp.dot(patches_ref[...], w_ref[...],
                  preferred_element_type=jnp.float32)
    out_ref[...] = (acc + b_ref[...]).astype(out_ref.dtype)


def patch_gen_forward(x, conv_w, conv_b, lin_w, lin_b, patch_size):
    """x: (B, 3, H, W) f32 (NCHW, like PyTorch). Returns (B, N, E) f32."""
    B, C, H, W = x.shape
    P = patch_size
    E = conv_w.shape[0]
    gh, gw = H // P, W // P
    N = gh * gw
    K = C * P * P
    R = B * N

    # --- fold conv + linear into one GEMM (done in f32, weight cast to bf16) ---
    w_fold, b_fold = _fold_params(conv_w, conv_b, lin_w, lin_b)   # (K, E), (E,)

    # --- glue: cast to bf16 FIRST, then extract non-overlapping patches -------
    patches = _extract_patches(x.astype(jnp.bfloat16), P)         # (R, K) bf16

    # --- padding so every tile is lane/sublane aligned and MXU-friendly -------
    Kp = _round_up(K, 128)                      # lane-aligned contraction dim
    Ep = _round_up(E, 128)                      # lane-aligned embed dim
    TM, Rp = _choose_row_tile(R, Kp, Ep)        # row tile chosen from R

    patches = jnp.pad(patches, ((0, Rp - R), (0, Kp - K)))
    w = jnp.pad(w_fold, ((0, Kp - K), (0, Ep - E))).astype(jnp.bfloat16)
    b = jnp.pad(b_fold.reshape(1, E), ((0, 0), (0, Ep - E))).astype(jnp.float32)

    flops = 2 * Rp * Kp * Ep
    bytes_accessed = (patches.size * 2 + w.size * 2 + b.size * 4 + Rp * Ep * 4)
    vmem_limit = min(48 * 1024 * 1024,
                     max(16 * 1024 * 1024,
                         int(_vmem_need_bytes(TM, Kp, Ep) * 1.25) + (2 << 20)))

    out = pl.pallas_call(
        _patch_gen_kernel,
        out_shape=jax.ShapeDtypeStruct((Rp, Ep), jnp.float32),
        grid_spec=pltpu.PrefetchScalarGridSpec(
            num_scalar_prefetch=0,
            grid=(Rp // TM,),
            in_specs=[
                pl.BlockSpec((TM, Kp), lambda i: (i, 0)),   # patches: row-tiled
                pl.BlockSpec((Kp, Ep), lambda i: (0, 0)),   # folded weight
                pl.BlockSpec((1, Ep), lambda i: (0, 0)),    # folded bias
            ],
            out_specs=pl.BlockSpec((TM, Ep), lambda i: (i, 0)),
        ),
        compiler_params=pltpu.CompilerParams(
            dimension_semantics=("parallel",),     # rows independent -> megacore
            vmem_limit_bytes=vmem_limit,
        ),
        cost_estimate=pl.CostEstimate(
            flops=flops, transcendentals=0, bytes_accessed=bytes_accessed),
    )(patches, w, b)

    # Slice off row / embed padding and restore (B, N, E).
    return out[:R, :E].reshape(B, N, E)


def _reference(x, conv_w, conv_b, lin_w, lin_b, patch_size):
    """Exact f32 reference matching the PyTorch forward."""
    y = jax.lax.conv_general_dilated(
        x, conv_w,
        window_strides=(patch_size, patch_size),
        padding="VALID",
        dimension_numbers=("NCHW", "OIHW", "NCHW"),
    ) + conv_b.reshape(1, -1, 1, 1)
    B, E, gh, gw = y.shape
    y = y.reshape(B, E, gh * gw).transpose(0, 2, 1)        # (B, N, E)
    y = jnp.einsum("bne,fe->bnf", y, lin_w) + lin_b
    return y


def _reference_emulated(x, conv_w, conv_b, lin_w, lin_b, patch_size):
    """bf16-emulated reference using the kernel's own numerics (f32 fold,
    bf16 operands, f32 accumulation) — allows a tight tolerance check."""
    B, C, H, W = x.shape
    P = patch_size
    E = conv_w.shape[0]
    N = (H // P) * (W // P)
    patches = _extract_patches(x.astype(jnp.bfloat16), P)            # (R, K)
    w_fold, b_fold = _fold_params(conv_w, conv_b, lin_w, lin_b)
    out = jnp.dot(patches, w_fold.astype(jnp.bfloat16),
                  preferred_element_type=jnp.float32) + b_fold
    return out.reshape(B, N, E)


if __name__ == "__main__":
    embed_dim = 64
    patch_size = 8
    B, C, H, W = 2, 3, 16, 16   # small but consistent with the module (in_channels=3)

    key = jax.random.PRNGKey(0)
    kx, k1, k2, k3, k4 = jax.random.split(key, 5)

    x = jax.random.normal(kx, (B, C, H, W), dtype=jnp.float32)

    # Deterministic synthetic parameters (PyTorch-like fan-in scaling).
    fan_in_conv = C * patch_size * patch_size
    conv_w = jax.random.uniform(
        k1, (embed_dim, C, patch_size, patch_size), jnp.float32,
        minval=-1.0, maxval=1.0) / jnp.sqrt(fan_in_conv)
    conv_b = jax.random.uniform(
        k2, (embed_dim,), jnp.float32, minval=-1.0, maxval=1.0) / jnp.sqrt(fan_in_conv)
    lin_w = jax.random.uniform(
        k3, (embed_dim, embed_dim), jnp.float32,
        minval=-1.0, maxval=1.0) / jnp.sqrt(embed_dim)
    lin_b = jax.random.uniform(
        k4, (embed_dim,), jnp.float32, minval=-1.0, maxval=1.0) / jnp.sqrt(embed_dim)

    run = jax.jit(functools.partial(patch_gen_forward, patch_size=patch_size))
    out = jax.block_until_ready(run(x, conv_w, conv_b, lin_w, lin_b))

    N = (H // patch_size) * (W // patch_size)
    assert out.shape == (B, N, embed_dim)

    ref_emul = _reference_emulated(x, conv_w, conv_b, lin_w, lin_b, patch_size)
    ref_exact = _reference(x, conv_w, conv_b, lin_w, lin_b, patch_size)
    # Same-numerics reference -> tight tolerance catches real bugs.
    assert jnp.allclose(out, ref_emul, atol=2e-3, rtol=2e-3), \
        "mismatch vs bf16-emulated reference"
    # Exact f32 reference -> loose tolerance (bf16 operands, f32 accumulation).
    assert jnp.allclose(out, ref_exact, atol=2e-2, rtol=2e-2), \
        "mismatch vs f32 reference"

    print("KERNEL_OK")
</pallas_src>

<mosaic_0001>
module attributes {stable_mosaic.version = 11 : i64} {
  func.func @_patch_gen_kernel(%arg0: i32, %arg1: memref<16x256xbf16, #tpu.memory_space<vmem>>, %arg2: memref<256x128xbf16, #tpu.memory_space<vmem>>, %arg3: memref<1x128xf32, #tpu.memory_space<vmem>>, %arg4: memref<16x128xf32, #tpu.memory_space<vmem>>) attributes {dimension_semantics = [#tpu.dimension_semantics<parallel>], iteration_bounds = array<i64: 1>, scalar_prefetch = 0 : i64, scratch_operands = 0 : i64, tpu.core_type = #tpu.core_type<tc>, window_params = [{transform_indices = @transform_0, window_bounds = array<i64: 16, 256>}, {pipeline_mode = #tpu.pipeline_mode<synchronous>, transform_indices = @transform_1, window_bounds = array<i64: 256, 128>}, {pipeline_mode = #tpu.pipeline_mode<synchronous>, transform_indices = @transform_2, window_bounds = array<i64: 1, 128>}, {transform_indices = @transform_3, window_bounds = array<i64: 16, 128>}]} {
    %c0 = arith.constant 0 : index
    %c0_0 = arith.constant 0 : index
    %0 = vector.load %arg1[%c0, %c0_0] : memref<16x256xbf16, #tpu.memory_space<vmem>>, vector<16x256xbf16>
    %c0_1 = arith.constant 0 : index
    %c0_2 = arith.constant 0 : index
    %1 = vector.load %arg2[%c0_1, %c0_2] : memref<256x128xbf16, #tpu.memory_space<vmem>>, vector<256x128xbf16>
    %cst = arith.constant dense<0.000000e+00> : vector<16x128xf32>
    %2 = tpu.matmul %0, %1, %cst {dimension_numbers = #tpu.dot_dimension_numbers<[1], [0], [0], [1], [0, 0, 1, 1], [], []>} : vector<16x256xbf16>, vector<256x128xbf16>, vector<16x128xf32> -> vector<16x128xf32>
    %c0_3 = arith.constant 0 : index
    %c0_4 = arith.constant 0 : index
    %3 = vector.load %arg3[%c0_3, %c0_4] : memref<1x128xf32, #tpu.memory_space<vmem>>, vector<1x128xf32>
    %4 = vector.broadcast %3 : vector<1x128xf32> to vector<16x128xf32>
    %5 = arith.addf %2, %4 : vector<16x128xf32>
    %c0_5 = arith.constant 0 : index
    %c0_6 = arith.constant 0 : index
    %6 = vector.load %arg4[%c0_5, %c0_6] : memref<16x128xf32, #tpu.memory_space<vmem>>, vector<16x128xf32>
    tpu.vector_store %arg4[%c0_5, %c0_6], %5 {strides = array<i32>} : memref<16x128xf32, #tpu.memory_space<vmem>>, vector<16x128xf32>,
    return
  }
  func.func @transform_0(%arg0: i32) -> (i32, i32) {
    %c0_i32 = arith.constant 0 : i32
    %c0_i32_0 = arith.constant 0 : i32
    return %arg0, %c0_i32 : i32, i32
  }
  func.func @transform_1(%arg0: i32) -> (i32, i32) {
    %c0_i32 = arith.constant 0 : i32
    %c0_i32_0 = arith.constant 0 : i32
    %c0_i32_1 = arith.constant 0 : i32
    return %c0_i32, %c0_i32_0 : i32, i32
  }
  func.func @transform_2(%arg0: i32) -> (i32, i32) {
    %c0_i32 = arith.constant 0 : i32
    %c0_i32_0 = arith.constant 0 : i32
    %c0_i32_1 = arith.constant 0 : i32
    return %c0_i32, %c0_i32_0 : i32, i32
  }
  func.func @transform_3(%arg0: i32) -> (i32, i32) {
    %c0_i32 = arith.constant 0 : i32
    %c0_i32_0 = arith.constant 0 : i32
    return %arg0, %c0_i32 : i32, i32
  }
}

</mosaic_0001>

<bundles_post_ra>
// kernel: patch_gen_forward.1
= control target key start
LH: loop header
LB: loop body
LE: loop exit
PB: predicated region body
PF: predicated region fallthrough
CT: control target
= control target key end

     0   :  { %s352_s1 = inlined_call_operand.vmem [shape: bf16[256,128], index: 1, kind: input, shape index: {}]   ;;  %s353_s0 = inlined_call_operand.vmem [shape: bf16[16,256], index: 0, kind: input, shape index: {}]   ;;  %s354_s2 = inlined_call_operand.vmem [shape: f32[1,128], index: 2, kind: input, shape index: {}]   ;;  %s355_s3 = inlined_call_operand.vmem [shape: f32[16,128], index: 3, kind: output, shape index: {}]  }
   0x1   :  { %v250_v0 = vld [vmem:[%s352_s1 + $0x78] sm:$0xff]   ;;  %v252_v2 = vld [vmem:[%s352_s1 + $0x70] sm:$0xff]   ;;  %v254_v4 = vld [vmem:[%s352_s1 + $0x68] sm:$0xff]  }
   0x2   :  { %v251_v1 = vld [vmem:[%s352_s1 + $0x38] sm:$0xff]   ;;  %228 = vmatprep.subr.bf16.mxu0 %v250_v0  ;;  %v253_v3 = vld [vmem:[%s352_s1 + $0x30] sm:$0xff]   ;;  %v255_v5 = vld [vmem:[%s352_s1 + $0x28] sm:$0xff]  }
   0x3   :  { %229 = vmatpush3.bf16.msra.mxu0 %v251_v1  ;;  %v256_v6 = vld [vmem:[%s352_s1 + $0x60] sm:$0xff]   ;;  %v258_v8 = vld [vmem:[%s352_s1 + $0x58] sm:$0xff]   ;;  %v260_v10 = vld [vmem:[%s352_s1 + $0x50] sm:$0xff]  }
   0x4   :  { %230 = vmatprep.subr.bf16.mxu0 %v252_v2  ;;  %v257_v7 = vld [vmem:[%s352_s1 + $0x20] sm:$0xff]   ;;  %v259_v9 = vld [vmem:[%s352_s1 + $0x18] sm:$0xff]   ;;  %v261_v12 = vld [vmem:[%s352_s1 + $0x10] sm:$0xff]  }
   0x5   :  { %v268_v11 = vld [vmem:[%s353_s0 + $0x4] ss:$8 sps:$4 sm:$0xff]   ;;  %v266_v17 = vld [vmem:[%s353_s0] ss:$8 sps:$4 sm:$0xff]  }
   0x6   :  { %194 = vmatprep.mubr.bf16.mxu0 %v268_v11  ;;  %v262_v13 = vld [vmem:[%s352_s1 + $0x48] sm:$0xff]   ;;  %v264_v15 = vld [vmem:[%s352_s1 + $0x40] sm:$0xff]  }
   0x7   :  { %231 = vmatpush3.bf16.msra.mxu0 %v253_v3  ;;  %v263_v14 = vld [vmem:[%s352_s1 + $0x8] sm:$0xff]   ;;  %v265_v16 = vld [vmem:[%s352_s1] sm:$0xff]  }
   0x8   :  { %232 = vmatprep.subr.bf16.mxu0 %v254_v4  ;;  %v209_v19 = vld [vmem:[%s354_s2] ss:$0 sm:$0xff] }
   0xb   :  { %233 = vmatpush3.bf16.msra.mxu0 %v255_v5 }
   0xc   :  { %234 = vmatprep.subr.bf16.mxu0 %v256_v6 }
   0xf   :  { %235 = vmatpush3.bf16.msra.mxu0 %v257_v7 }
  0x10   :  { %236 = vmatprep.subr.bf16.mxu0 %v258_v8 }
  0x13   :  { %237 = vmatpush3.bf16.msra.mxu0 %v259_v9 }
  0x14   :  { %238 = vmatprep.subr.bf16.mxu0 %v260_v10 }
  0x17   :  { %239 = vmatpush3.bf16.msra.mxu0 %v261_v12 }
  0x18   :  { %240 = vmatprep.subr.bf16.mxu0 %v262_v13 }
  0x1b   :  { %241 = vmatpush3.bf16.msra.mxu0 %v263_v14 }
  0x1c   :  { %242 = vmatprep.subr.bf16.mxu0 %v264_v15 }
  0x1f   :  { %243 = vmatpush3.bf16.msra.mxu0 %v265_v16 }
  0x22   :  { %195 = vmatmul.mubr.bf16.vlgmr.msra.gmra.mxu0 %v266_v17 }
  0xe2   :  { %v244_v18 = vpop.f32.mrf.mxu0 }
  0xe4   :  { %v245_v20 = vpop.f32.mrf.mxu0 }
  0xe5   :  { %v246_v21 = vadd.f32 %v245_v20, %v244_v18 }
  0xe6   :  { %v247_v22 = vpop.f32.mrf.mxu0 }
  0xe7   :  { %v197_v23 = vadd.f32 %v246_v21, %v209_v19 }
  0xe8   :  { %v248_v24 = vpop.f32.mrf.mxu0 }
  0xe9   :  { %203 = vst [vmem:[%s355_s3] sm:$0xff] %v197_v23  ;;  %v249_v25 = vadd.f32 %v248_v24, %v247_v22 }
  0xeb   :  { %v200_v26 = vadd.f32 %v249_v25, %v209_v19 }
  0xed   :  { %204 = vst [vmem:[%s355_s3 + $0x8] sm:$0xff] %v200_v26 }

</bundles_post_ra>
